<compile_context>
chip_gen: v7x
topology: tpu7x:2x2x1
jax: 0.10.0
libtpu: 0.0.40
codegen_flags: <defaults>
</compile_context>

<pallas_src>
import functools

import jax
import jax.numpy as jnp
from jax.experimental import pallas as pl
from jax.experimental.pallas import tpu as pltpu


_TARGET_BLOCK_BYTES = 16 * 1024 * 1024  # ~16 MiB input block per grid step


def _round_up(x, m):
    return ((x + m - 1) // m) * m


def _tv_kernel(x_ref, scales_ref, out_ref, *, total_rows, img_w):
    """One grid step over T flattened (batch*channel) image slices."""
    T, L = x_ref.shape
    i = pl.program_id(0)

    x = x_ref[...].astype(jnp.float32)                         # (T, L)

    # Mask rows past the end of the (batch*channel) axis (grid padding).
    # Must happen BEFORE any arithmetic so OOB padding (even NaN) is excluded.
    if total_rows % T != 0:
        row_ids = jax.lax.broadcasted_iota(jnp.int32, (T, 1), 0)
        x = jnp.where(i * T + row_ids < total_rows, x, 0.0)

    # W-direction neighbour: x[k+1]   (left-roll by 1 == roll by L-1, XLU slot)
    dw = pltpu.roll(x, shift=L - 1, axis=1) - x
    # H-direction neighbour: x[k+w]   (left-roll by w == roll by L-w)
    dh = pltpu.roll(x, shift=L - img_w, axis=1) - x

    # Precomputed per-lane scales already fold in the boundary masks and the
    # 1/count_h, 1/count_w normalization (zero on masked lanes).
    h_scale = scales_ref[0:1, :]                               # (1, L)
    w_scale = scales_ref[1:2, :]                               # (1, L)
    combined = dh * dh * h_scale + dw * dw * w_scale           # (T, L)

    # Sublane reduce on the MXU (idle unit here) -> lane-dense (1, L) partial.
    ones = jnp.ones((1, T), dtype=jnp.float32)
    out_ref[...] = jnp.dot(ones, combined, preferred_element_type=jnp.float32)


def tv_loss(x, tv_loss_weight=1.0):
    """Total-variation loss matching TVLoss.forward (PyTorch, NCHW input).

    Note: h == 1 or w == 1 gives count_h / count_w == 0; PyTorch produces a
    nan/inf there. Here the degenerate direction simply contributes 0.
    """
    b, c, h, w = x.shape
    M = b * c
    L = h * w
    x_flat = x.reshape(M, L)  # bf16 inputs stay bf16 through the DMA; upcast in-kernel

    # counts: numel of the sliced tensor divided by batch size (PyTorch formula)
    count_h = float(c * (h - 1) * w)
    count_w = float(c * h * (w - 1))
    inv_count_h = (1.0 / count_h) if count_h > 0.0 else 0.0
    inv_count_w = (1.0 / count_w) if count_w > 0.0 else 0.0

    # Per-lane masks fused with normalization, built once outside the kernel.
    lane = jnp.arange(L, dtype=jnp.int32)
    h_scale = jnp.where(lane < L - w, inv_count_h, 0.0).astype(jnp.float32)
    w_scale = jnp.where(lane % w != w - 1, inv_count_w, 0.0).astype(jnp.float32)
    scales = jnp.stack([h_scale, w_scale], axis=0)             # (2, L)

    # Pick T: multiple of 8 (or == M when M <= 8), block up to ~16 MiB, and
    # prefer >= 4 grid steps (v7x two-TC balance) when M is large enough.
    row_bytes = L * x_flat.dtype.itemsize
    if M <= 8:
        T = M
    else:
        t_target = max(8, (_TARGET_BLOCK_BYTES // row_bytes) // 8 * 8)
        t_balance = max(8, _round_up((M + 3) // 4, 8))
        T = max(8, min(_round_up(M, 8), t_target, t_balance))
    G = (M + T - 1) // T

    block_bytes = T * row_bytes
    # 2x double-buffered input block + small outputs/scales, with headroom.
    vmem_limit = min(128 * 1024 * 1024,
                     max(48 * 1024 * 1024, 2 * block_bytes + (4 << 20)))

    kernel = functools.partial(_tv_kernel, total_rows=M, img_w=w)

    parts = pl.pallas_call(
        kernel,
        out_shape=jax.ShapeDtypeStruct((G, 1, L), jnp.float32),
        grid_spec=pltpu.PrefetchScalarGridSpec(
            num_scalar_prefetch=0,
            grid=(G,),
            in_specs=[
                pl.BlockSpec((T, L), lambda i: (i, 0)),
                pl.BlockSpec((2, L), lambda i: (0, 0)),   # VMEM-resident scales
            ],
            out_specs=pl.BlockSpec((None, 1, L), lambda i: (i, 0, 0)),
        ),
        compiler_params=pltpu.CompilerParams(
            dimension_semantics=("parallel",),
            vmem_limit_bytes=vmem_limit,
        ),
        cost_estimate=pl.CostEstimate(
            flops=8 * M * L,
            transcendentals=0,
            bytes_accessed=M * L * x_flat.dtype.itemsize + G * L * 4 + 2 * L * 4,
        ),
    )(x_flat, scales)

    total = jnp.sum(parts)
    return tv_loss_weight * 2.0 * total / b


def tv_loss_ref(x, tv_loss_weight=1.0):
    """Pure-JAX reference of the PyTorch forward, for verification."""
    b, c, h, w = x.shape
    count_h = c * (h - 1) * w
    count_w = c * h * (w - 1)
    h_tv = jnp.sum((x[:, :, 1:, :] - x[:, :, : h - 1, :]) ** 2)
    w_tv = jnp.sum((x[:, :, :, 1:] - x[:, :, :, : w - 1]) ** 2)
    return tv_loss_weight * 2.0 * (h_tv / count_h + w_tv / count_w) / b


if __name__ == "__main__":
    key = jax.random.PRNGKey(0)

    # Test 1: small NCHW batch consistent with the module (square, pow-2 spatial).
    x1 = jax.random.normal(key, (2, 4, 16, 16), dtype=jnp.float32)
    out1 = jax.block_until_ready(tv_loss(x1, tv_loss_weight=1.0))
    ref1 = tv_loss_ref(x1, tv_loss_weight=1.0)
    assert jnp.allclose(out1, ref1, rtol=1e-5, atol=1e-5), (out1, ref1)

    # Test 2: non-square, non-power-of-two H != W, and M not a multiple of T
    # (exercises the %w mask lanes and the padded-last-block path).
    key2 = jax.random.PRNGKey(1)
    x2 = jax.random.normal(key2, (3, 5, 12, 20), dtype=jnp.float32)
    out2 = jax.block_until_ready(tv_loss(x2, tv_loss_weight=0.5))
    ref2 = tv_loss_ref(x2, tv_loss_weight=0.5)
    assert jnp.allclose(out2, ref2, rtol=1e-5, atol=1e-5), (out2, ref2)

    print("KERNEL_OK")
</pallas_src>

<mosaic_0001>
module attributes {stable_mosaic.version = 11 : i64} {
  func.func @_tv_kernel(%arg0: i32, %arg1: memref<8x256xf32, #tpu.memory_space<vmem>>, %arg2: memref<2x256xf32, #tpu.memory_space<vmem>>, %arg3: memref<1x1x256xf32, #tpu.memory_space<vmem>>) attributes {dimension_semantics = [#tpu.dimension_semantics<parallel>], iteration_bounds = array<i64: 1>, scalar_prefetch = 0 : i64, scratch_operands = 0 : i64, tpu.core_type = #tpu.core_type<tc>, window_params = [{transform_indices = @transform_0, window_bounds = array<i64: 8, 256>}, {pipeline_mode = #tpu.pipeline_mode<synchronous>, transform_indices = @transform_1, window_bounds = array<i64: 2, 256>}, {transform_indices = @transform_2, window_bounds = array<i64: 1, 1, 256>}]} {
    %c0 = arith.constant 0 : index
    %c0_0 = arith.constant 0 : index
    %0 = vector.load %arg1[%c0, %c0_0] : memref<8x256xf32, #tpu.memory_space<vmem>>, vector<8x256xf32>
    %c255_i32 = arith.constant 255 : i32
    %1 = tpu.dynamic_rotate %0 by %c255_i32 dim 1 : vector<8x256xf32>, i32 -> vector<8x256xf32>
    %2 = arith.subf %1, %0 : vector<8x256xf32>
    %c240_i32 = arith.constant 240 : i32
    %3 = tpu.dynamic_rotate %0 by %c240_i32 dim 1 : vector<8x256xf32>, i32 -> vector<8x256xf32>
    %4 = arith.subf %3, %0 : vector<8x256xf32>
    %c0_1 = arith.constant 0 : index
    %c0_2 = arith.constant 0 : index
    %5 = vector.load %arg2[%c0_1, %c0_2] : memref<2x256xf32, #tpu.memory_space<vmem>>, vector<1x256xf32>
    %c1 = arith.constant 1 : index
    %c0_3 = arith.constant 0 : index
    %6 = vector.load %arg2[%c1, %c0_3] : memref<2x256xf32, #tpu.memory_space<vmem>>, vector<1x256xf32>
    %7 = arith.mulf %4, %4 : vector<8x256xf32>
    %8 = vector.broadcast %5 : vector<1x256xf32> to vector<8x256xf32>
    %9 = arith.mulf %7, %8 : vector<8x256xf32>
    %10 = arith.mulf %2, %2 : vector<8x256xf32>
    %11 = vector.broadcast %6 : vector<1x256xf32> to vector<8x256xf32>
    %12 = arith.mulf %10, %11 : vector<8x256xf32>
    %13 = arith.addf %9, %12 : vector<8x256xf32>
    %cst = arith.constant 1.000000e+00 : f32
    %14 = vector.broadcast %cst : f32 to vector<1x8xf32>
    %cst_4 = arith.constant dense<0.000000e+00> : vector<1x256xf32>
    %15 = tpu.matmul %14, %13, %cst_4 {dimension_numbers = #tpu.dot_dimension_numbers<[1], [0], [0], [1], [0, 0, 1, 1], [], []>} : vector<1x8xf32>, vector<8x256xf32>, vector<1x256xf32> -> vector<1x256xf32>
    %c0_5 = arith.constant 0 : index
    %c0_6 = arith.constant 0 : index
    %c0_7 = arith.constant 0 : index
    %16 = vector.load %arg3[%c0_5, %c0_6, %c0_7] : memref<1x1x256xf32, #tpu.memory_space<vmem>>, vector<1x1x256xf32>
    %17 = vector.shape_cast %16 : vector<1x1x256xf32> to vector<1x256xf32>
    %18 = vector.shape_cast %15 : vector<1x256xf32> to vector<1x1x256xf32>
    tpu.vector_store %arg3[%c0_5, %c0_6, %c0_7], %18 {strides = array<i32>} : memref<1x1x256xf32, #tpu.memory_space<vmem>>, vector<1x1x256xf32>,
    return
  }
  func.func @transform_0(%arg0: i32) -> (i32, i32) {
    %c0_i32 = arith.constant 0 : i32
    %c0_i32_0 = arith.constant 0 : i32
    return %arg0, %c0_i32 : i32, i32
  }
  func.func @transform_1(%arg0: i32) -> (i32, i32) {
    %c0_i32 = arith.constant 0 : i32
    %c0_i32_0 = arith.constant 0 : i32
    %c0_i32_1 = arith.constant 0 : i32
    return %c0_i32, %c0_i32_0 : i32, i32
  }
  func.func @transform_2(%arg0: i32) -> (i32, i32, i32) {
    %c0_i32 = arith.constant 0 : i32
    %c0_i32_0 = arith.constant 0 : i32
    %c0_i32_1 = arith.constant 0 : i32
    return %arg0, %c0_i32, %c0_i32_0 : i32, i32, i32
  }
}

</mosaic_0001>

<bundles_post_ra>
// kernel: tpu_custom_call.1
= control target key start
LH: loop header
LB: loop body
LE: loop exit
PB: predicated region body
PF: predicated region fallthrough
CT: control target
= control target key end

     0   :  { %7 = vsyncpa [#allocation3], 0  ;;  %s347_s0 = inlined_call_operand.hbm [shape: f32[8,256], index: 0, kind: input, shape index: {}]   ;;  %s348_s1 = inlined_call_operand.hbm [shape: f32[2,256], index: 1, kind: input, shape index: {}]   ;;  %s349_s2 = inlined_call_operand.hbm [shape: f32[1,1,256], index: 2, kind: output, shape index: {}]  }
   0x1   :  { %8 = vsyncpa [#allocation6], 0 }
   0x2   :  { %9 = vsyncpa [#allocation4], 0  ;;  %s288_s9 = smov [#allocation2]   ;;  %s289_s11 = smov [#allocation5]  }
   0x3   :  { %s16_s10 = sshll.u32 %s288_s9, 4  ;;  %s26_s12 = sshll.u32 %s289_s11, 4  ;;  %s17_s10 = int_to_ptr.vmem [resolvable:$true] %s16_s10  ;;  %s27_s12 = int_to_ptr.vmem [resolvable:$true] %s26_s12 }
   0x4   :  { %s216_s15 = scalar_lea.hbm %s347_s0, 256 }
   0x5   :  { %p217_p0 = scmp.ne.s32.totalorder %s347_s0, %s216_s15  ;;  %p220_p1 = scmp.lt.u32.totalorder %s216_s15, %s347_s0 }
   0x7   :  { %p222_p2 = pnand %p220_p1, %p217_p0 }
   0x9   :  { %225 = shalt.err (!%p222_p2)
}
   0xa   :  { %s226_s20 = scalar_lea.vmem %s17_s10, 256  ;;  %p231_p4 = scmp.lt.s32.totalorder %s17_s10, %s17_s10 }
   0xb   :  { %p227_p3 = scmp.ne.s32.totalorder %s17_s10, %s226_s20  ;;  %p232_p5 = scmp.lt.s32.totalorder %s226_s20, %s226_s20 }
   0xd   :  { %p233_p6 = por %p232_p5, %p231_p4 }
   0xf   :  { %p234_p7 = pnand %p233_p6, %p227_p3 }
  0x11   :  { %237 = shalt.err (!%p234_p7)
}
  0x12   :  { %19 = dma.hbm_to_vmem [thread:$0]  %s347_s0, 256, %s17_s10, [#allocation3]  }
  0x13   :  { %s238_s25 = scalar_lea.hbm %s348_s1, 64 }
  0x14   :  { %p239_p8 = scmp.ne.s32.totalorder %s348_s1, %s238_s25  ;;  %p242_p9 = scmp.lt.u32.totalorder %s238_s25, %s348_s1 }
  0x16   :  { %p244_p10 = pnand %p242_p9, %p239_p8 }
  0x18   :  { %247 = shalt.err (!%p244_p10)
}
  0x19   :  { %s248_s30 = scalar_lea.vmem %s27_s12, 64  ;;  %p253_p12 = scmp.lt.s32.totalorder %s27_s12, %s27_s12 }
  0x1a   :  { %p249_p11 = scmp.ne.s32.totalorder %s27_s12, %s248_s30  ;;  %p254_p13 = scmp.lt.s32.totalorder %s248_s30, %s248_s30 }
  0x1c   :  { %p255_p0 = por %p254_p13, %p253_p12 }
  0x1e   :  { %p256_p1 = pnand %p255_p0, %p249_p11 }
  0x20   :  { %259 = shalt.err (!%p256_p1)
}
  0x21   :  { %29 = dma.hbm_to_vmem [thread:$0]  %s348_s1, 64, %s27_s12, [#allocation6]  }
  0x22   :  { %282 = dma.done.wait [#allocation3], 256  }
  0x23   :  { %283 = vsyncadd [#allocation3], 4294967040 }
  0x24   :  { %284 = dma.done.wait [#allocation6], 64  }
  0x25   :  { %285 = vsyncadd [#allocation6], 4294967232  ;;  %v36_v0 = vld [vmem:[#allocation2] sm:$0xff]  ;;  %s290_s4 = smov 112   ;;  %s291_s5 = smov 127   ;;  %v37_v1 = vld [vmem:[#allocation2 + $0x8] sm:$0xff]  ;;  %v42_v3 = vlaneseq }
  0x26   :  { %49 = vrot.lane.b32.xlu1 %v36_v0, %s290_s4  ;;  %38 = vrot.lane.b32.xlu0 %v36_v0, %s291_s5  ;;  %v292_v2 = vmov 0.0   ;;  %v58_v10 = vld [vmem:[#allocation5] ss:$2 sm:$0x3]  ;;  %vm93_vm2 = vcmask 64512   ;;  %v293_v36 = vmov 1.0  }
  0x27   :  { %161 = vmatprep.mubr.f32.mxu0 %v292_v2  ;;  %v65_v4 = vshrl.u32 %v42_v3, 7  ;;  %v43_v5 = vand.u32 127, %v42_v3  ;;  %v60_v11 = vld [vmem:[#allocation5 + $0x1] ss:$2 sm:$0x3]  ;;  %s295_s1 = smov [#allocation7]  }
  0x28   :  { %v294_v37 = vmov 1966171168   ;;  %s197_s6 = sshll.u32 %s295_s1, 4  ;;  %vm188_vm3 = vcmp.lt.s32.totalorder %v42_v3, 256  ;;  %s198_s6 = int_to_ptr.vmem [resolvable:$true] %s197_s6 }
  0x29   :  { %v70_v8 = vsub.s32 1, %v65_v4  ;;  %v66_v9 = vsub.s32 0, %v65_v4  ;;  %vm53_vm0 = vcmp.lt.s32.totalorder %v43_v5, 112  ;;  %vm44_vm1 = vcmp.lt.s32.totalorder %v43_v5, 127  ;;  %s260_s7 = scalar_lea.vmem %s198_s6, 32  ;;  %p265_p3 = scmp.lt.s32.totalorder %s198_s6, %s198_s6 }
  0x2a   :  { %51 = vrot.lane.b32.xlu1 %v37_v1, %s290_s4  ;;  %40 = vrot.lane.b32.xlu0 %v37_v1, %s291_s5  ;;  %v172_v38 = vunpack.c.l.s4 %v294_v37  ;;  %p261_p2 = scmp.ne.s32.totalorder %s198_s6, %s260_s7  ;;  %p266_p4 = scmp.lt.s32.totalorder %s260_s7, %s260_s7 }
  0x2b   :  { %v71_v14 = vrot.slane %v58_v10, %v70_v8  ;;  %v86_v15 = vrot.slane %v60_v11, %v70_v8  ;;  %v67_v16 = vrot.slane %v58_v10, %v66_v9  ;;  %v82_v17 = vrot.slane %v60_v11, %v66_v9 }
  0x2c   :  { %v173_v39 = vunpack.c.0.s8 %v172_v38  ;;  %p267_p5 = por %p266_p4, %p265_p3 }
  0x2e   :  { %v176_v41 = vsub.s32 %v173_v39, %v65_v4  ;;  %p268_p6 = pnand %p267_p5, %p261_p2 }
  0x98   :  { %v50_v6 = vpop.permute.xlu1 %49  ;;  %v39_v7 = vpop.permute.xlu0 %38 }
  0x9c   :  { %v52_v12 = vpop.permute.xlu1 %51  ;;  %v41_v13 = vpop.permute.xlu0 %40 }
  0x9d   :  { %v54_v18 = vsel %vm53_vm0, %v50_v6, %v52_v12  ;;  %v55_v19 = vsel %vm53_vm0, %v52_v12, %v50_v6  ;;  %v45_v20 = vsel %vm44_vm1, %v39_v7, %v41_v13  ;;  %v46_v21 = vsel %vm44_vm1, %v41_v13, %v39_v7 }
  0x9e   :  { %v56_v22 = vsub.f32 %v54_v18, %v36_v0  ;;  %v57_v23 = vsub.f32 %v55_v19, %v37_v1  ;;  %v47_v24 = vsub.f32 %v45_v20, %v36_v0  ;;  %v48_v25 = vsub.f32 %v46_v21, %v37_v1 }
  0xa0   :  { %v61_v26 = vmul.f32 %v56_v22, %v56_v22  ;;  %v62_v27 = vmul.f32 %v57_v23, %v57_v23  ;;  %v76_v28 = vmul.f32 %v47_v24, %v47_v24  ;;  %v77_v29 = vmul.f32 %v48_v25, %v48_v25 }
  0xa2   :  { %v75_v30 = vmul.f32 %v71_v14, %v62_v27  ;;  %v90_v31 = vmul.f32 %v86_v15, %v77_v29  ;;  %v74_v32 = vmul.f32 %v67_v16, %v61_v26  ;;  %v89_v33 = vmul.f32 %v82_v17, %v76_v28 }
  0xa4   :  { %v92_v34 = vadd.f32 %v90_v31, %v75_v30  ;;  %v91_v35 = vadd.f32 %v89_v33, %v74_v32 }
  0xa6   :  { %97 = vmatprep.subr.mxu0 %v92_v34 }
  0xa7   :  { %98 = vmatpush1.msra.mxu0 %v91_v35 }
  0xa8   :  { %207 = vmatmul.mubr.msk.f32.vlgmr.msra.gmra.mrb[0].mxu0 %vm93_vm2, %v293_v36 }
 0x17b   :  { %v163_v40 = vpop.f32.mrb[0].mxu0 }
 0x17c   :  { %v165_v42 = vpop.f32.mrb[1].mxu0 }
 0x17d   :  { %v170_v43 = vcombine.low %v163_v40, %v165_v42 }
 0x17f   :  { %v177_v44 = vrot.slane %v170_v43, %v176_v41 }
 0x181   :  { %v184_v45 = vrot.slane %v177_v44, %v176_v41 }
 0x183   :  { %190 = vst.msk [vmem:[#allocation7] sm:$0x3] %vm188_vm3, %v184_v45 }
 0x184   :  { %271 = shalt.err (!%p268_p6)
}
 0x185   :  { %s272_s10 = scalar_lea.hbm %s349_s2, 32 }
 0x186   :  { %p273_p7 = scmp.ne.s32.totalorder %s349_s2, %s272_s10  ;;  %p276_p8 = scmp.lt.u32.totalorder %s272_s10, %s349_s2 }
 0x188   :  { %p278_p9 = pnand %p276_p8, %p273_p7 }
 0x18a   :  { %281 = shalt.err (!%p278_p9)
}
 0x18b   :  { %200 = dma.vmem_to_hbm [thread:$0]  %s198_s6, 32, %s349_s2, [#allocation4]  }
 0x18c   :  { %286 = dma.done.wait [#allocation4], 32  }
 0x18d   :  { %287 = vsyncadd [#allocation4], 4294967264 }
 0x18e   :  { %204 = vsyncpa [#allocation3], 1 }
 0x18f   :  { %205 = vsyncpa [#allocation6], 1 }
 0x190   :  { %206 = vsyncpa [#allocation4], 1 }

</bundles_post_ra>
